<compile_context>
chip_gen: v7x
topology: tpu7x:2x2x1
jax: 0.10.0
libtpu: 0.0.40
codegen_flags: <defaults>
</compile_context>

<pallas_src>
import functools
import math

import jax
import jax.numpy as jnp
from jax.experimental import pallas as pl
from jax.experimental.pallas import tpu as pltpu


# ---------------------------------------------------------------------------
# Helpers
# ---------------------------------------------------------------------------
def _round_up(x, m):
    return ((x + m - 1) // m) * m


def _choose_m_tile(M, k_pad, itemsize=2, tm_cap=512, a_budget=16 * 1024 * 1024):
    """Pick the M tile: multiple of 16 (bf16 sublanes), capped so the
    double-buffered A tile stays under ~16 MiB, and >= 2 grid blocks whenever
    M allows (gives v7x's second TensorCore parallel work)."""
    g = 16
    tm_vmem = max(g, (a_budget // (2 * k_pad * itemsize)) // g * g)
    tm_max = min(tm_cap, tm_vmem)
    if M <= g:
        return g, g
    tm = min(tm_max, _round_up((M + 1) // 2, g))
    return tm, _round_up(M, tm)


# ---------------------------------------------------------------------------
# Pallas kernel: one M-tile of (tm, K) @ (K, Cout) + bias + activation.
# Weight and bias blocks are constant across the grid (VMEM-resident);
# accumulation is f32 inside the MXU dot; epilogue is fused.
# ---------------------------------------------------------------------------
def _matmul_bias_act_kernel(x_ref, w_ref, b_ref, o_ref, *, activation):
    acc = jnp.dot(x_ref[...], w_ref[...], preferred_element_type=jnp.float32)
    acc = acc + b_ref[...]                      # (tm, Cout) + (1, Cout) broadcast
    if activation == "leaky_relu":
        acc = jnp.where(acc >= 0.0, acc, 0.2 * acc)
    elif activation == "sigmoid":
        acc = jax.nn.sigmoid(acc)
    o_ref[...] = acc.astype(o_ref.dtype)


def _pallas_matmul_bias_act(patches, w_mat, bias2d, activation, out_dtype):
    """patches: (M, K_pad) bf16 (K_pad already a multiple of 128),
    w_mat: (K_pad, Cout_pad) bf16, bias2d: (1, Cout_pad) f32."""
    M, K = patches.shape
    K2, cout_pad = w_mat.shape
    assert K == K2 and K % 128 == 0 and cout_pad % 128 == 0

    tm, M_pad = _choose_m_tile(M, K)
    if M_pad != M:
        patches = jnp.pad(patches, ((0, M_pad - M), (0, 0)))
    grid = (M_pad // tm,)

    out_itemsize = jnp.dtype(out_dtype).itemsize
    # VMEM footprint: double-buffered A and out tiles, resident W + bias (x2 margin).
    footprint = (2 * tm * K * 2 + 2 * K * cout_pad * 2
                 + 2 * tm * cout_pad * out_itemsize + 2 * cout_pad * 4)
    vmem_limit = int(min(48 * 1024 * 1024,
                         max(32 * 1024 * 1024, footprint + (8 << 20))))

    kernel = functools.partial(_matmul_bias_act_kernel, activation=activation)
    flops = 2 * M_pad * K * cout_pad
    transcendentals = M_pad * cout_pad if activation == "sigmoid" else 0
    bytes_accessed = (M_pad * K + K * cout_pad) * 2 + M_pad * cout_pad * out_itemsize

    out = pl.pallas_call(
        kernel,
        out_shape=jax.ShapeDtypeStruct((M_pad, cout_pad), out_dtype),
        grid_spec=pltpu.PrefetchScalarGridSpec(
            num_scalar_prefetch=0,
            grid=grid,
            in_specs=[
                pl.BlockSpec((tm, K), lambda i: (i, 0)),
                pl.BlockSpec((K, cout_pad), lambda i: (0, 0)),   # resident weight
                pl.BlockSpec((1, cout_pad), lambda i: (0, 0)),   # resident bias
            ],
            out_specs=pl.BlockSpec((tm, cout_pad), lambda i: (i, 0)),
        ),
        compiler_params=pltpu.CompilerParams(
            dimension_semantics=("parallel",),
            vmem_limit_bytes=vmem_limit),
        cost_estimate=pl.CostEstimate(
            flops=flops, transcendentals=transcendentals,
            bytes_accessed=bytes_accessed),
    )(patches, w_mat, bias2d)
    return out, M


# ---------------------------------------------------------------------------
# Glue: im2col patch extraction (pure reshuffle, plain JAX, bf16).
# Cin is zero-padded so K = kh*kw*Cin_pad is already lane-aligned (128).
# ---------------------------------------------------------------------------
def conv2d_act(x_nhwc, layer, activation, out_dtype):
    stride = layer["stride"]
    kh = kw = layer["k"]
    pad = layer["pad"]
    cin_pad = layer["cin_pad"]
    cout = layer["cout"]

    x = x_nhwc.astype(jnp.bfloat16)
    N, H, W, C = x.shape
    # Single small copy: spatial conv padding + channel padding to cin_pad.
    x = jnp.pad(x, ((0, 0), (pad, pad), (pad, pad), (0, cin_pad - C)))
    Hp, Wp = H + 2 * pad, W + 2 * pad
    OH = (Hp - kh) // stride + 1
    OW = (Wp - kw) // stride + 1
    cols = []
    for i in range(kh):
        for j in range(kw):
            cols.append(x[:, i:i + (OH - 1) * stride + 1:stride,
                             j:j + (OW - 1) * stride + 1:stride, :])
    patches = jnp.stack(cols, axis=3).reshape(N * OH * OW, kh * kw * cin_pad)
    # TODO(synk): fold im2col into the kernel (per-M-tile row-band DMA of the padded
    # NHWC input via memory_space=pl.ANY + pltpu.make_async_copy) to remove the
    # kh*kw-replicated HBM round trip at production resolutions.

    out, M = _pallas_matmul_bias_act(patches, layer["w_mat"], layer["b2d"],
                                     activation, out_dtype)
    return out[:M, :cout].reshape(N, OH, OW, cout)


# ---------------------------------------------------------------------------
# Parameter setup (deterministic, synthetic) + spectral norm glue (init-time)
# ---------------------------------------------------------------------------
def spectral_normalize(w_oihw, key, power_iterations=1, eps=1e-12):
    cout = w_oihw.shape[0]
    w_mat = w_oihw.reshape(cout, -1)
    u = jax.random.normal(key, (cout,), dtype=w_mat.dtype)
    u = u / (jnp.linalg.norm(u) + eps)
    v = None
    for _ in range(power_iterations):
        v = w_mat.T @ u
        v = v / (jnp.linalg.norm(v) + eps)
        u = w_mat @ v
        u = u / (jnp.linalg.norm(u) + eps)
    sigma = u @ (w_mat @ v)
    return w_oihw / sigma


def _prep_conv_layer(w_oihw, b, stride):
    """Hoisted weight prep: transpose/reshape, lane-dense padding, bf16 cast."""
    cout, cin, kh, kw = w_oihw.shape
    pad = kh // 2                                       # == ceil((k-1)/2)
    cin_step = 128 // math.gcd(128, kh * kw)            # k=4 -> pad Cin to mult of 8
    cin_pad = _round_up(cin, cin_step)
    cout_pad = _round_up(cout, 128)
    # PyTorch (Cout, Cin, KH, KW) -> (KH, KW, Cin, Cout), zero-pad Cin/Cout,
    # flatten to (KH*KW*Cin_pad, Cout_pad).  Matches im2col flatten order (kh, kw, cin).
    w = jnp.transpose(w_oihw, (2, 3, 1, 0))
    w = jnp.pad(w, ((0, 0), (0, 0), (0, cin_pad - cin), (0, cout_pad - cout)))
    w_mat = w.reshape(kh * kw * cin_pad, cout_pad).astype(jnp.bfloat16)
    b2d = jnp.pad(b, (0, cout_pad - cout)).reshape(1, cout_pad).astype(jnp.float32)
    return {"w_mat": w_mat, "b2d": b2d, "stride": stride, "k": kh, "pad": pad,
            "cin_pad": cin_pad, "cout": cout,
            "w_f32": w_oihw, "b_f32": b}     # f32 copies kept for the reference check


def init_params(key, input_nc, ndf=64, n_layers=3):
    kw = 4
    # (cin, cout, stride, spectral_norm?)
    specs = [(input_nc, ndf, 2, False)]
    nf = ndf
    for _ in range(1, n_layers):
        nf_prev = nf
        nf = min(nf * 2, 512)
        specs.append((nf_prev, nf, 2, True))
    nf_prev = nf
    nf = min(nf * 2, 512)
    specs.append((nf_prev, nf, 1, True))
    specs.append((nf, 1, 1, False))

    keys = jax.random.split(key, len(specs) * 3)
    params = []
    for i, (cin, cout, stride, sn) in enumerate(specs):
        wk, bk, uk = keys[3 * i], keys[3 * i + 1], keys[3 * i + 2]
        w = jax.random.normal(wk, (cout, cin, kw, kw), dtype=jnp.float32) * 0.05
        b = jax.random.normal(bk, (cout,), dtype=jnp.float32) * 0.01
        if sn:
            w = spectral_normalize(w, uk)
        params.append(_prep_conv_layer(w, b, stride))
    return params


# ---------------------------------------------------------------------------
# Forward pass (Pallas) and plain-JAX reference
# ---------------------------------------------------------------------------
def nlayer_discriminator(x_nchw, params, use_sigmoid=False):
    x = jnp.transpose(x_nchw, (0, 2, 3, 1))   # NCHW -> NHWC
    n = len(params)
    for i, p in enumerate(params):
        last = (i == n - 1)
        activation = ("sigmoid" if use_sigmoid else None) if last else "leaky_relu"
        # bf16 everywhere (halves HBM traffic; head upcast to f32 below).
        x = conv2d_act(x, p, activation, jnp.bfloat16)
    return jnp.transpose(x.astype(jnp.float32), (0, 3, 1, 2))   # NHWC -> NCHW


def reference_forward(x_nchw, params, use_sigmoid=False):
    x = jnp.transpose(x_nchw, (0, 2, 3, 1)).astype(jnp.float32)
    n = len(params)
    for i, p in enumerate(params):
        w_hwio = jnp.transpose(p["w_f32"], (2, 3, 1, 0))
        x = jax.lax.conv_general_dilated(
            x, w_hwio, window_strides=(p["stride"], p["stride"]),
            padding=[(p["pad"], p["pad"]), (p["pad"], p["pad"])],
            dimension_numbers=("NHWC", "HWIO", "NHWC"))
        x = x + p["b_f32"]
        if i < n - 1:
            x = jnp.where(x >= 0.0, x, 0.2 * x)
        elif use_sigmoid:
            x = jax.nn.sigmoid(x)
    return jnp.transpose(x, (0, 3, 1, 2))


if __name__ == "__main__":
    key = jax.random.PRNGKey(0)
    k_param, k_x = jax.random.split(key)

    input_nc = 4
    params = init_params(k_param, input_nc=input_nc, ndf=64, n_layers=3)

    x = jax.random.normal(k_x, (2, input_nc, 16, 16), dtype=jnp.float32)
    out = nlayer_discriminator(x, params, use_sigmoid=False)
    out = jax.block_until_ready(out)

    # 16 -(s2)-> 9 -(s2)-> 5 -(s2)-> 3 -(s1)-> 4 -(s1)-> 5, channels -> 1
    assert out.shape == (2, 1, 5, 5), out.shape
    assert bool(jnp.all(jnp.isfinite(out)))

    # Loose numerical check vs f32 XLA conv reference (bf16 operands, f32 accumulate).
    ref = reference_forward(x, params, use_sigmoid=False)
    rel_err = float(jnp.max(jnp.abs(out - ref)) / (jnp.max(jnp.abs(ref)) + 1e-6))
    assert rel_err < 0.1, f"relative max error too large: {rel_err}"

    print("KERNEL_OK")
</pallas_src>

<mosaic_0001>
module attributes {stable_mosaic.version = 11 : i64} {
  func.func @_matmul_bias_act_kernel(%arg0: i32, %arg1: memref<96x128xbf16, #tpu.memory_space<vmem>>, %arg2: memref<128x128xbf16, #tpu.memory_space<vmem>>, %arg3: memref<1x128xf32, #tpu.memory_space<vmem>>, %arg4: memref<96x128xbf16, #tpu.memory_space<vmem>>) attributes {dimension_semantics = [#tpu.dimension_semantics<parallel>], iteration_bounds = array<i64: 2>, scalar_prefetch = 0 : i64, scratch_operands = 0 : i64, tpu.core_type = #tpu.core_type<tc>, window_params = [{transform_indices = @transform_0, window_bounds = array<i64: 96, 128>}, {pipeline_mode = #tpu.pipeline_mode<synchronous>, transform_indices = @transform_1, window_bounds = array<i64: 128, 128>}, {pipeline_mode = #tpu.pipeline_mode<synchronous>, transform_indices = @transform_2, window_bounds = array<i64: 1, 128>}, {transform_indices = @transform_3, window_bounds = array<i64: 96, 128>}]} {
    %c0 = arith.constant 0 : index
    %c0_0 = arith.constant 0 : index
    %0 = vector.load %arg1[%c0, %c0_0] : memref<96x128xbf16, #tpu.memory_space<vmem>>, vector<96x128xbf16>
    %c0_1 = arith.constant 0 : index
    %c0_2 = arith.constant 0 : index
    %1 = vector.load %arg2[%c0_1, %c0_2] : memref<128x128xbf16, #tpu.memory_space<vmem>>, vector<128x128xbf16>
    %cst = arith.constant dense<0.000000e+00> : vector<96x128xf32>
    %2 = tpu.matmul %0, %1, %cst {dimension_numbers = #tpu.dot_dimension_numbers<[1], [0], [0], [1], [0, 0, 1, 1], [], []>} : vector<96x128xbf16>, vector<128x128xbf16>, vector<96x128xf32> -> vector<96x128xf32>
    %c0_3 = arith.constant 0 : index
    %c0_4 = arith.constant 0 : index
    %3 = vector.load %arg3[%c0_3, %c0_4] : memref<1x128xf32, #tpu.memory_space<vmem>>, vector<1x128xf32>
    %4 = vector.broadcast %3 : vector<1x128xf32> to vector<96x128xf32>
    %5 = arith.addf %2, %4 : vector<96x128xf32>
    %cst_5 = arith.constant 0.000000e+00 : f32
    %6 = vector.broadcast %cst_5 : f32 to vector<96x128xf32>
    %7 = arith.cmpf oge, %5, %6 : vector<96x128xf32>
    %cst_6 = arith.constant 2.000000e-01 : f32
    %8 = vector.broadcast %cst_6 : f32 to vector<96x128xf32>
    %9 = arith.mulf %8, %5 : vector<96x128xf32>
    %10 = arith.select %7, %5, %9 : vector<96x128xi1>, vector<96x128xf32>
    %11 = arith.truncf %10 : vector<96x128xf32> to vector<96x128xbf16>
    %c0_7 = arith.constant 0 : index
    %c0_8 = arith.constant 0 : index
    %12 = vector.load %arg4[%c0_7, %c0_8] : memref<96x128xbf16, #tpu.memory_space<vmem>>, vector<96x128xbf16>
    tpu.vector_store %arg4[%c0_7, %c0_8], %11 {strides = array<i32>} : memref<96x128xbf16, #tpu.memory_space<vmem>>, vector<96x128xbf16>,
    return
  }
  func.func @transform_0(%arg0: i32) -> (i32, i32) {
    %c0_i32 = arith.constant 0 : i32
    %c0_i32_0 = arith.constant 0 : i32
    return %arg0, %c0_i32 : i32, i32
  }
  func.func @transform_1(%arg0: i32) -> (i32, i32) {
    %c0_i32 = arith.constant 0 : i32
    %c0_i32_0 = arith.constant 0 : i32
    %c0_i32_1 = arith.constant 0 : i32
    return %c0_i32, %c0_i32_0 : i32, i32
  }
  func.func @transform_2(%arg0: i32) -> (i32, i32) {
    %c0_i32 = arith.constant 0 : i32
    %c0_i32_0 = arith.constant 0 : i32
    %c0_i32_1 = arith.constant 0 : i32
    return %c0_i32, %c0_i32_0 : i32, i32
  }
  func.func @transform_3(%arg0: i32) -> (i32, i32) {
    %c0_i32 = arith.constant 0 : i32
    %c0_i32_0 = arith.constant 0 : i32
    return %arg0, %c0_i32 : i32, i32
  }
}

</mosaic_0001>

<bundles_post_ra>
// kernel: tpu_custom_call.1
= control target key start
LH: loop header
LB: loop body
LE: loop exit
PB: predicated region body
PF: predicated region fallthrough
CT: control target
= control target key end

     0   :  { %8 = vsyncpa [#allocation3], 0  ;;  %s1209_s0 = inlined_call_operand.hbm [shape: bf16[192,128], index: 0, kind: input, shape index: {}]   ;;  %s1210_s1 = inlined_call_operand.hbm [shape: bf16[128,128], index: 1, kind: input, shape index: {}]   ;;  %s1211_s2 = inlined_call_operand.vmem [shape: f32[1,128], index: 2, kind: input, shape index: {}]   ;;  %s1212_s3 = inlined_call_operand.hbm [shape: bf16[192,128], index: 3, kind: output, shape index: {}]  }
   0x1   :  { %10 = vsyncpa [#allocation3 + $0x1], 0 }
   0x2   :  { %11 = vsyncpa [#allocation6], 0 }
   0x3   :  { %12 = vsyncpa [#allocation4], 0 }
   0x4   :  { %14 = vsyncpa [#allocation4 + $0x1], 0  ;;  %s978_s12 = smov 0   ;;  %s980_s13 = smov 0  }
   0x5   :  { %s982_s14 = smov 0   ;;  %s984_s15 = smov 0  }
   0x6 LB: > { %s999_s16 = sadd.s32 4294967295, %s949_s15   ;;  %s600_s17 = sadd.s32 4294967294, %s949_s15   ;;  %s949_s15 = sphi %s984_s15, %s1232_s15   ;;  %s945_s14 = sphi %s982_s14, %s1231_s14   ;;  %s941_s13 = sphi %s980_s13, %s1230_s13   ;;  %s937_s12 = sphi %s978_s12, %s1229_s12  }
   0x7   : > { %p40_p0 = scmp.ne.s32.totalorder %s941_s13, %s937_s12  ;;  %p1213_p1 = scmp.eq.s32.totalorder %s999_s16, 0 }
   0x8   : > { %p112_p3 = scmp.eq.s32.totalorder %s600_s17, 1  ;;  %p601_p5 = scmp.ge.s32.totalorder %s949_s15, 1 }
   0x9   : > { %p1008_p4 = por %p1213_p1, %p40_p0  ;;  %p119_p7 = scmp.lt.s32.totalorder %s949_s15, 3 }
   0xa   : > { %p1013_p6 = por %p112_p3, %p40_p0  ;;  %s951_s21 = smov [#allocation5]  }
   0xb   : > { %s1216_s18 = scalar_select %p1008_p4, 1, 0 }
   0xc   : > { %s1217_s19 = scalar_select %p1013_p6, 1, 0 }
   0xd   : > { %p1018_p8 = pnand %p601_p5, %p119_p7  ;;  %s131_s22 = sshll.u32 %s951_s21, 4  ;;  %s1022_s22 = int_to_ptr.vmem [resolvable:$true] %s131_s22 }
   0xe   : > { %s1034_s24 = sadd.s32 1, %s949_s15   ;;  %s27_s25 = sadd.s32 1, %s945_s14 }
   0xf   : > { %s1218_s20 = scalar_select %p1018_p8, 1, 0 }
  0x10   : > { %p754_p9 = pneg %p1018_p8  ;;  %s24_s26 = ssub.s32 %s949_s15, %s1034_s24 }
  0x11   : > { %s821_s29 = scalar_lea.hbm %s1210_s1, 1024 }
  0x12   : > { %p1029_p11 = pnand %p754_p9, %p1213_p1  ;;  %p822_p12 = scmp.ne.s32.totalorder %s1210_s1, %s821_s29 }
  0x13   : > { %p828_p5 = scmp.lt.u32.totalorder %s821_s29, %s1210_s1 }
  0x14   : > { %p823_p13 = pneg %p1029_p11 }
  0x16   : > { %p824_p0 = pnand %p823_p13, %p822_p12 }
  0x18   : > { %p825_p3 = pneg %p824_p0 }
  0x1a   : > { %p830_p7 = pnand %p828_p5, %p825_p3 }
  0x1c   : > { %833 = shalt.err (!%p830_p7)
}
  0x1d   : > { %s834_s7 = scalar_lea.vmem %s1022_s22, 1024  ;;  %p842_p2 = scmp.lt.s32.totalorder %s1022_s22, %s1022_s22 }
  0x1e   : > { %p835_p9 = scmp.ne.s32.totalorder %s1022_s22, %s834_s7  ;;  %p843_p6 = scmp.lt.s32.totalorder %s834_s7, %s834_s7 }
  0x20   : > { %p837_p10 = pnand %p835_p9, %p823_p13  ;;  %p844_p4 = por %p843_p6, %p842_p2 }
  0x22   : > { %p838_p1 = pneg %p837_p10 }
  0x24   : > { %p845_p8 = pnand %p844_p4, %p838_p1 }
  0x26   : > { %848 = shalt.err (!%p845_p8)
}
  0x27   : > { %s952_s8 = smov 64   ;;  %s953_s9 = smov 4  }
  0x28   : > { %757 = dma.hbm_to_vmem [thread:$0]  (!%p1029_p11), %s1210_s1, 1024, %s1022_s22, [#allocation6], %s952_s8, %s952_s8, %s953_s9  }
  0x29   : > { %p25_p1 = scmp.eq.s32.totalorder %s24_s26, 0  ;;  %p34_p2 = scmp.ne.s32.totalorder %s945_s14, %s941_s13 }
  0x2a   : > { %p35_p4 = scmp.eq.s32.totalorder %s949_s15, 0  ;;  %p767_p6 = scmp.lt.s32.totalorder %s949_s15, 2 }
  0x2b   : > { %s1068_s17 = scalar_select %p25_p1, %s945_s14, %s27_s25  }
  0x2c   : > { %p36_p8 = por %p35_p4, %p34_p2  ;;  %p1220_p10 = scmp.eq.s32.totalorder %s999_s16, 1 }
  0x2d   : > { %s148_s23 = sand.u32 1, %s945_s14   ;;  %s637_s27 = smul.u32 768, %s949_s15 }
  0x2e   : > { %p1072_p12 = por %p1220_p10, %p34_p2  ;;  %s744_s28 = smul.u32 48, %s148_s23 }
  0x2f   : > { %p1078_p13 = pnand %p767_p6, %p36_p8  ;;  %s1085_s25 = scalar_lea.hbm %s1209_s0, %s637_s27 }
  0x30   : > { %s152_s30 = scalar_lea.vmem [#allocation2], %s744_s28  ;;  %s1089_s5 = scalar_lea.sflag [#allocation3], %s148_s23 }
  0x31   : > { %s159_s4 = sshll.u32 %s152_s30, 4  ;;  %s849_s6 = scalar_lea.hbm %s1085_s25, 768  ;;  %s1087_s4 = int_to_ptr.vmem [resolvable:$true] %s159_s4 }
  0x32   : > { %p850_p11 = scmp.ne.s32.totalorder %s1085_s25, %s849_s6  ;;  %p851_p0 = pneg %p1078_p13 }
  0x33   : > { %s854_s11 = scalar_lea.hbm %s1209_s0, 1536  ;;  %p855_p7 = scmp.lt.u32.totalorder %s1085_s25, %s1209_s0 }
  0x34   : > { %p852_p3 = pnand %p851_p0, %p850_p11  ;;  %p856_p9 = scmp.lt.u32.totalorder %s854_s11, %s849_s6 }
  0x35   : > { %p858_p2 = scmp.lt.u32.totalorder %s849_s6, %s1085_s25 }
  0x36   : > { %p853_p5 = pneg %p852_p3  ;;  %p857_p1 = por %p856_p9, %p855_p7 }
  0x38   : > { %p859_p4 = por %p858_p2, %p857_p1 }
  0x3a   : > { %p860_p6 = pnand %p859_p4, %p853_p5 }
  0x3c   : > { %863 = shalt.err (!%p860_p6)
}
  0x3d   : > { %s864_s23 = scalar_lea.vmem %s1087_s4, 768  ;;  %s954_s28 = smov [#allocation2]  }
  0x3e   : > { %p865_p8 = scmp.ne.s32.totalorder %s1087_s4, %s864_s23  ;;  %s869_s26 = sshll.u32 %s954_s28, 4  ;;  %s870_s26 = int_to_ptr.vmem [resolvable:$false] %s869_s26 }
  0x3f   : > { %s871_s30 = scalar_lea.vmem %s870_s26, 1536  ;;  %p872_p3 = scmp.lt.s32.totalorder %s1087_s4, %s870_s26 }
  0x40   : > { %p867_p10 = pnand %p865_p8, %p851_p0  ;;  %p873_p7 = scmp.lt.s32.totalorder %s871_s30, %s864_s23 }
  0x42   : > { %p868_p11 = pneg %p867_p10  ;;  %p874_p9 = por %p873_p7, %p872_p3 }
  0x44   : > { %p875_p1 = pnand %p874_p9, %p868_p11 }
  0x46   : > { %878 = shalt.err (!%p875_p1)
}
  0x47   : > { %761 = dma.hbm_to_vmem [thread:$0]  (!%p1078_p13), %s1085_s25, 768, %s1087_s4, %s1089_s5, %s952_s8, %s952_s8, %s953_s9  }
  0x48   : > { %p1223_p0 = scmp.ne.s32.totalorder %s1218_s20, 0 }
  0x49   : > { %s1123_s6 = sand.u32 (!%p1223_p0), 1, %s941_s13   ;;  %p1224_p5 = scmp.ne.s32.totalorder (!%p1223_p0), %s1216_s18, 0 }
  0x4a   : > { %171 = sbr.rel (%p1223_p0) target bundleno = 364 (0x16c), region = 32  ;;  %s174_s10 = scalar_lea.sflag (!%p1223_p0), [#allocation3], %s1123_s6 }
  0x4b   : > { %s745_s7 = smul.u32 (!%p1223_p0), 48, %s1123_s6 }
  0x4d   : > { %s1129_s29 = scalar_lea.vmem (!%p1223_p0), [#allocation2], %s745_s7 }
  0x51   : > { %924 = dma.done.wait (%p1224_p5), %s174_s10, 768  }
  0x52   : > { %926 = vsyncadd (%p1224_p5), %s174_s10, 4294966528  ;;  %p1225_p13 = scmp.eq.s32.totalorder %s999_s16, 0 }
  0x54   : > { %928 = dma.done.wait (%p1225_p13), [#allocation6], 1024   ;;  %p1226_p2 = pmov %p1225_p13 }
  0x55   : > { %v807_v0 = vld [vmem:[#allocation5] sm:$0xff]   ;;  %v808_v1 = vld [vmem:[#allocation5 + $0x8] sm:$0xff]   ;;  %v809_v2 = vld [vmem:[#allocation5 + $0x10] sm:$0xff]   ;;  %s1150_s8 = scalar_lea.vmem [#allocation7], %s745_s7  ;;  %s650_s25 = smul.u32 768, %s999_s16 }
  0x56   : > { %930 = vsyncadd (%p1226_p2), [#allocation6], 4294966272  ;;  %728 = vmatprep.subr.bf16.mxu1 %v807_v0  ;;  %700 = vmatprep.subr.bf16.mxu0 %v807_v0  ;;  %v810_v3 = vld [vmem:[#allocation5 + $0x18] sm:$0xff]   ;;  %v815_v4 = vld [vmem:[%s1129_s29 + $0x10] sm:$0xff]   ;;  %s517_s9 = sshll.u32 %s1150_s8, 4  ;;  %s504_s16 = scalar_lea.sflag [#allocation4], %s1123_s6  ;;  %s1158_s9 = int_to_ptr.vmem [resolvable:$true] %s517_s9 }
  0x57   : > { %736 = vmatpush3.bf16.msra.mxu1 %v807_v0  ;;  %701 = vmatpush3.bf16.msra.mxu0 %v807_v0  ;;  %v817_v5 = vld [vmem:[%s1129_s29] sm:$0xff]   ;;  %v812_v7 = vld [vmem:[#allocation5 + $0x28] sm:$0xff]   ;;  %v814_v9 = vld [vmem:[#allocation5 + $0x38] sm:$0xff]   ;;  %s1163_s11 = scalar_lea.hbm %s1212_s3, %s650_s25  ;;  %s879_s27 = scalar_lea.vmem %s1158_s9, 768 }
  0x58   : > { %729 = vmatprep.subr.bf16.mxu1 %v808_v1  ;;  %702 = vmatprep.subr.bf16.mxu0 %v808_v1  ;;  %v811_v6 = vld [vmem:[#allocation5 + $0x20] sm:$0xff]   ;;  %v813_v8 = vld [vmem:[#allocation5 + $0x30] sm:$0xff]   ;;  %v816_v10 = vld [vmem:[%s1129_s29 + $0x18] sm:$0xff]   ;;  %p880_p4 = scmp.ne.s32.totalorder %s1158_s9, %s879_s27  ;;  %s955_s22 = smov [#allocation7]  }
  0x59   : > { %720 = vmatprep.mubr.bf16.mxu1 %v815_v4  ;;  %716 = vmatprep.mubr.bf16.mxu0 %v817_v5  ;;  %v818_v11 = vld [vmem:[%s1129_s29 + $0x8] sm:$0xff]   ;;  %v819_v12 = vld [vmem:[%s1129_s29 + $0x20] sm:$0xff]   ;;  %s883_s23 = sshll.u32 %s955_s22, 4  ;;  %s884_s23 = int_to_ptr.vmem [resolvable:$false] %s883_s23 }
  0x5a   : > { %v820_v13 = vld [vmem:[%s1129_s29 + $0x28] sm:$0xff]   ;;  %v607_v14 = vld [vmem:[%s1211_s2] ss:$0 sm:$0xff]  ;;  %p881_p6 = pnand %p880_p4, %p1072_p12  ;;  %s885_s28 = scalar_lea.vmem %s884_s23, 1536 }
  0x5b   : > { %737 = vmatpush3.bf16.msra.mxu1 %v808_v1  ;;  %703 = vmatpush3.bf16.msra.mxu0 %v808_v1  ;;  %p886_p10 = scmp.lt.s32.totalorder %s1158_s9, %s884_s23  ;;  %p887_p11 = scmp.lt.s32.totalorder %s885_s28, %s879_s27 }
  0x5c   : > { %730 = vmatprep.subr.bf16.mxu1 %v809_v2  ;;  %704 = vmatprep.subr.bf16.mxu0 %v809_v2  ;;  %p882_p8 = pneg %p881_p6 }
  0x5d   : > { %p888_p3 = por %p887_p11, %p886_p10 }
  0x5f   : > { %738 = vmatpush3.bf16.msra.mxu1 %v809_v2  ;;  %705 = vmatpush3.bf16.msra.mxu0 %v809_v2  ;;  %p889_p7 = pnand %p888_p3, %p882_p8 }
  0x60   : > { %731 = vmatprep.subr.bf16.mxu1 %v810_v3  ;;  %706 = vmatprep.subr.bf16.mxu0 %v810_v3 }
  0x63   : > { %739 = vmatpush3.bf16.msra.mxu1 %v810_v3  ;;  %707 = vmatpush3.bf16.msra.mxu0 %v810_v3 }
  0x64   : > { %732 = vmatprep.subr.bf16.mxu1 %v811_v6  ;;  %708 = vmatprep.subr.bf16.mxu0 %v811_v6 }
  0x67   : > { %740 = vmatpush3.bf16.msra.mxu1 %v811_v6  ;;  %709 = vmatpush3.bf16.msra.mxu0 %v811_v6 }
  0x68   : > { %733 = vmatprep.subr.bf16.mxu1 %v812_v7  ;;  %710 = vmatprep.subr.bf16.mxu0 %v812_v7 }
  0x6b   : > { %741 = vmatpush3.bf16.msra.mxu1 %v812_v7  ;;  %711 = vmatpush3.bf16.msra.mxu0 %v812_v7 }
  0x6c   : > { %734 = vmatprep.subr.bf16.mxu1 %v813_v8  ;;  %712 = vmatprep.subr.bf16.mxu0 %v813_v8 }
  0x6f   : > { %742 = vmatpush3.bf16.msra.mxu1 %v813_v8  ;;  %713 = vmatpush3.bf16.msra.mxu0 %v813_v8 }
  0x70   : > { %735 = vmatprep.subr.bf16.mxu1 %v814_v9  ;;  %714 = vmatprep.subr.bf16.mxu0 %v814_v9 }
  0x73   : > { %743 = vmatpush3.bf16.msra.mxu1 %v814_v9  ;;  %715 = vmatpush3.bf16.msra.mxu0 %v814_v9 }
  0x76   : > { %721 = vmatmul.mubr.bf16.vlgmr.msra.gmra.mrb[0].mxu1 %v816_v10  ;;  %717 = vmatmul.mubr.bf16.vlgmr.msra.gmra.mrb[0].mxu0 %v818_v11 }
  0x77   : > { %724 = vmatprep.mubr.bf16.mxu1 %v819_v12 }
  0x7e   : > { %725 = vmatmul.mubr.bf16.gmra.mrb[4].mxu1 %v820_v13 }
 0x149   : > { %v722_v15 = vpop.f32.mrb[0].mxu1  ;;  %v718_v16 = vpop.f32.mrb[0].mxu0 }
 0x14a   : > { %v385_v17 = vadd.f32 %v722_v15, %v607_v14  ;;  %v376_v18 = vpop.f32.mrb[1].mxu1  ;;  %v369_v19 = vadd.f32 %v718_v16, %v607_v14  ;;  %v360_v20 = vpop.f32.mrb[1].mxu0 }
 0x14b   : > { %v377_v21 = vadd.f32 %v607_v14, %v376_v18  ;;  %v723_v22 = vpop.f32.mrb[2].mxu1  ;;  %v361_v23 = vadd.f32 %v607_v14, %v360_v20  ;;  %v719_v24 = vpop.f32.mrb[2].mxu0 }
 0x14c   : > { %vm413_vm0 = vcmp.ge.f32.partialorder %v385_v17, 0.0  ;;  %v425_v25 = vmul.f32 0.2, %v385_v17  ;;  %v388_v26 = vadd.f32 %v723_v22, %v607_v14  ;;  %v379_v27 = vpop.f32.mrb[3].mxu1  ;;  %v363_v28 = vpop.f32.mrb[3].mxu0  ;;  %vm409_vm3 = vcmp.ge.f32.partialorder %v369_v19, 0.0 }
 0x14d   : > { %v423_v29 = vmul.f32 0.2, %v377_v21  ;;  %v421_v30 = vmul.f32 0.2, %v369_v19  ;;  %v380_v31 = vadd.f32 %v607_v14, %v379_v27  ;;  %vm411_vm1 = vcmp.ge.f32.partialorder %v377_v21, 0.0 }
 0x14e   : > { %vm414_vm2 = vcmp.ge.f32.partialorder %v388_v26, 0.0  ;;  %v426_v32 = vmul.f32 0.2, %v388_v26  ;;  %v437_v33 = vsel %vm413_vm0, %v385_v17, %v425_v25  ;;  %vm407_vm5 = vcmp.ge.f32.partialorder %v361_v23, 0.0 }
 0x14f   : > { %vm412_vm4 = vcmp.ge.f32.partialorder %v380_v31, 0.0  ;;  %v424_v34 = vmul.f32 0.2, %v380_v31  ;;  %v419_v36 = vmul.f32 0.2, %v361_v23  ;;  %v372_v37 = vadd.f32 %v719_v24, %v607_v14 }
 0x150   : > { %v438_v35 = vsel %vm414_vm2, %v388_v26, %v426_v32  ;;  %v364_v38 = vadd.f32 %v607_v14, %v363_v28  ;;  %v435_v39 = vsel %vm411_vm1, %v377_v21, %v423_v29  ;;  %v433_v41 = vsel %vm409_vm3, %v369_v19, %v421_v30 }
 0x151   : > { %v669_v40 = vpack.c.bf16 %v438_v35, %v437_v33  ;;  %v436_v42 = vsel %vm412_vm4, %v380_v31, %v424_v34  ;;  %v726_v43 = vpop.f32.mrb[4].mxu1  ;;  %v431_v45 = vsel %vm407_vm5, %v361_v23, %v419_v36  ;;  %vm410_vm6 = vcmp.ge.f32.partialorder %v372_v37, 0.0 }
 0x152   : > { %v664_v44 = vpack.c.bf16 %v436_v42, %v435_v39  ;;  %v422_v46 = vmul.f32 0.2, %v372_v37  ;;  %v392_v47 = vpop.f32.mrb[5].mxu1  ;;  %vm408_vm7 = vcmp.ge.f32.partialorder %v364_v38, 0.0  ;;  %v420_v48 = vmul.f32 0.2, %v364_v38 }
 0x153   : > { %683 = vst [vmem:[%s1150_s8 + $0x18] sm:$0xff] %v669_v40   ;;  %v401_v49 = vadd.f32 %v726_v43, %v607_v14  ;;  %v393_v50 = vadd.f32 %v607_v14, %v392_v47  ;;  %v727_v51 = vpop.f32.mrb[6].mxu1 }
 0x154   : > { %682 = vst [vmem:[%s1150_s8 + $0x10] sm:$0xff] %v664_v44   ;;  %v434_v52 = vsel %vm410_vm6, %v372_v37, %v422_v46  ;;  %v404_v53 = vadd.f32 %v727_v51, %v607_v14  ;;  %v395_v54 = vpop.f32.mrb[7].mxu1  ;;  %v432_v56 = vsel %vm408_vm7, %v364_v38, %v420_v48 }
 0x155   : > { %v659_v55 = vpack.c.bf16 %v434_v52, %v433_v41  ;;  %v429_v57 = vmul.f32 0.2, %v401_v49  ;;  %v654_v58 = vpack.c.bf16 %v432_v56, %v431_v45  ;;  %vm417_vm8 = vcmp.ge.f32.partialorder %v401_v49, 0.0 }
 0x156   : > { %vm418_vm9 = vcmp.ge.f32.partialorder %v404_v53, 0.0  ;;  %v427_v59 = vmul.f32 0.2, %v393_v50  ;;  %v430_v60 = vmul.f32 0.2, %v404_v53  ;;  %v396_v61 = vadd.f32 %v607_v14, %v395_v54 }
 0x157   : > { %681 = vst [vmem:[%s1150_s8 + $0x8] sm:$0xff] %v659_v55   ;;  %655 = vst [vmem:[%s1150_s8] sm:$0xff] %v654_v58   ;;  %vm415_vm10 = vcmp.ge.f32.partialorder %v393_v50, 0.0  ;;  %v441_v62 = vsel %vm417_vm8, %v401_v49, %v429_v57 }
 0x158   : > { %v442_v63 = vsel %vm418_vm9, %v404_v53, %v430_v60  ;;  %vm416_vm11 = vcmp.ge.f32.partialorder %v396_v61, 0.0  ;;  %v428_v0 = vmul.f32 0.2, %v396_v61  ;;  %v439_v2 = vsel %vm415_vm10, %v393_v50, %v427_v59 }
 0x159   : > { %v679_v1 = vpack.c.bf16 %v442_v63, %v441_v62 }
 0x15a   : > { %v440_v3 = vsel %vm416_vm11, %v396_v61, %v428_v0 }
 0x15b   : > { %685 = vst [vmem:[%s1150_s8 + $0x28] sm:$0xff] %v679_v1   ;;  %v674_v4 = vpack.c.bf16 %v440_v3, %v439_v2 }
 0x15d   : > { %684 = vst [vmem:[%s1150_s8 + $0x20] sm:$0xff] %v674_v4  }
 0x15e   : > { %892 = shalt.err (!%p889_p7)
}
 0x15f   : > { %s893_s26 = scalar_lea.hbm %s1163_s11, 768  ;;  %s897_s10 = scalar_lea.hbm %s1212_s3, 1536 }
 0x160   : > { %p894_p9 = scmp.ne.s32.totalorder %s1163_s11, %s893_s26  ;;  %p898_p5 = scmp.lt.u32.totalorder %s1163_s11, %s1212_s3 }
 0x161   : > { %p899_p13 = scmp.lt.u32.totalorder %s897_s10, %s893_s26  ;;  %p901_p4 = scmp.lt.u32.totalorder %s893_s26, %s1163_s11 }
 0x162   : > { %p895_p1 = pnand %p894_p9, %p1072_p12 }
 0x163   : > { %p900_p2 = por %p899_p13, %p898_p5 }
 0x164   : > { %p896_p0 = pneg %p895_p1 }
 0x165   : > { %p902_p6 = por %p901_p4, %p900_p2 }
 0x167   : > { %p903_p8 = pnand %p902_p6, %p896_p0 }
 0x169   : > { %906 = shalt.err (!%p903_p8)
}
 0x16a   : > { %s956_s20 = smov 64   ;;  %s957_s8 = smov 4  }
 0x16b   : > { %752 = dma.vmem_to_hbm [thread:$0]  (%p1072_p12), %s1158_s9, 768, %s1163_s11, %s504_s16, %s956_s20, %s956_s20, %s957_s8  }
 0x16c PF: > { %s532_s25 = sand.u32 1, %s937_s12   ;;  %p1227_p10 = scmp.ne.s32.totalorder %s1217_s19, 0 }
 0x16d   : > { %p1228_p11 = scmp.ge.s32.totalorder %s949_s15, 2  ;;  %s533_s4 = scalar_lea.sflag [#allocation4], %s532_s25 }
 0x16f   : > { %p763_p3 = pnand %p1228_p11, %p1227_p10 }
 0x171   : > { %932 = dma.done.wait (!%p763_p3), %s533_s4, 768  }
 0x172   : > { %934 = vsyncadd (!%p763_p3), %s533_s4, 4294966528  ;;  %p17_p7 = scmp.ge.s32.totalorder %s1034_s24, 4   ;;  %s1229_s12 = smov %s941_s13 }
 0x173   : > { %s1230_s13 = smov %s945_s14  ;;  %s1231_s14 = smov %s1068_s17 }
 0x174   : > { %s1232_s15 = smov %s1034_s24  ;;  %19 = sbr.rel (!%p17_p7) target bundleno = 6 (0x6), region = 81 }
 0x17b   :  { %538 = vsyncpa [#allocation3], 1 }
 0x17c   :  { %540 = vsyncpa [#allocation3 + $0x1], 1 }
 0x17d   :  { %541 = vsyncpa [#allocation6], 1 }
 0x17e   :  { %542 = vsyncpa [#allocation4], 1 }
 0x17f   :  { %544 = vsyncpa [#allocation4 + $0x1], 1 }

</bundles_post_ra>
